<compile_context>
chip_gen: v7x
topology: tpu7x:2x2x1
jax: 0.10.0
libtpu: 0.0.40
codegen_flags: <defaults>
</compile_context>

<pallas_src>
import numpy as np
import jax
import jax.numpy as jnp
from jax.experimental import pallas as pl
from jax.experimental.pallas import tpu as pltpu

H = 128
W = 128
C_IN = 3
BN_EPS = 1e-5
LN_EPS = 1e-5

# SMEM scalar packing (index -> meaning)
#  0..2 : conv (3->1, 1x1) per-input-channel weights
#  3    : conv bias
#  4, 5 : dyn.conv weight, bias          (1->1, 1x1)
#  6, 7 : bn folded scale, shift         (eval-mode BatchNorm2d)
#  8, 9 : sub.conv weight, bias          (1->1, 1x1)
# 10,11 : sub.bn folded scale, shift
# 12,13 : sub.conv1 weight, bias         (1->1, 1x1)
# 14    : linear bias


def _sum_all(a):
    # Full-plane reduction kept 2-D ((1, 1)) so we never materialize rank-0 values.
    return jnp.sum(jnp.sum(a, axis=1, keepdims=True), axis=0, keepdims=True)


def _fused_forward_kernel(scal_ref, x_ref, ln_w_ref, ln_b_ref, lin_w_ref, o_ref):
    # conv: Conv2d(3, 1, kernel_size=1) -> weighted sum over the 3 input channels
    y = (x_ref[0] * scal_ref[0] + x_ref[1] * scal_ref[1]
         + x_ref[2] * scal_ref[2] + scal_ref[3])                      # (H, W)
    # dyn: DynamicModel -> Conv2d(1, 1, 1)   (x is never None on this path)
    y = y * scal_ref[4] + scal_ref[5]
    # bn: BatchNorm2d(1), eval mode, folded to scale/shift
    y = y * scal_ref[6] + scal_ref[7]

    # --- SubModel (bypass=True) ---
    # sub.conv: Conv2d(1, 1, 1)
    y = y * scal_ref[8] + scal_ref[9]
    # sub.bn: BatchNorm2d(1), eval mode, folded
    y = y * scal_ref[10] + scal_ref[11]
    # sub.quant: identity (fp32)
    # sub.relu
    y = jnp.maximum(y, 0.0)
    # sub.conv1: Conv2d(1, 1, 1)
    y = y * scal_ref[12] + scal_ref[13]
    # sub.dequant: identity (fp32); sub.fp32 skipped (bypass=True)
    # sub.norm: LayerNorm([1, H, W]) over the whole plane
    inv_n = 1.0 / float(H * W)
    mu = _sum_all(y) * inv_n                                          # (1, 1)
    d = y - mu
    var = _sum_all(d * d) * inv_n                                     # (1, 1)
    y = d * jax.lax.rsqrt(var + LN_EPS) * ln_w_ref[...] + ln_b_ref[...]

    # fp32: FP32Model -> channel dim == 1 here, so x + x
    y = y + y

    # view(1, -1) + Linear(H*W, 1): dot product with the flattened weight row
    acc = _sum_all(y * lin_w_ref[...]) + scal_ref[14]                 # (1, 1)
    # lane-dense padded output; wrapper slices back to (1, 1)
    o_ref[...] = jnp.broadcast_to(acc, o_ref.shape).astype(o_ref.dtype)


def dynamic_control_model_forward(params, x):
    """x: (1, 3, H, W) float32 -> (1, 1) float32."""
    out = pl.pallas_call(
        _fused_forward_kernel,
        out_shape=jax.ShapeDtypeStruct((1, 128), jnp.float32),
        in_specs=[
            pl.BlockSpec(memory_space=pltpu.MemorySpace.SMEM),   # packed scalar params (15,)
            pl.BlockSpec(memory_space=pltpu.MemorySpace.VMEM),   # input planes (3, H, W)
            pl.BlockSpec(memory_space=pltpu.MemorySpace.VMEM),   # layernorm weight (H, W)
            pl.BlockSpec(memory_space=pltpu.MemorySpace.VMEM),   # layernorm bias   (H, W)
            pl.BlockSpec(memory_space=pltpu.MemorySpace.VMEM),   # linear weight    (H, W)
        ],
        out_specs=pl.BlockSpec(memory_space=pltpu.MemorySpace.VMEM),
    )(params["scalars"], x.reshape(C_IN, H, W), params["ln_w"], params["ln_b"],
      params["lin_w_2d"])
    return out[:, :1]


# ----------------------------- Deterministic parameter init -----------------------------
def init_params(key):
    ks = jax.random.split(key, 20)

    def u(k, shape, bound):
        return jax.random.uniform(k, shape, jnp.float32, -bound, bound)

    # Conv2d(3, 1, 1): fan_in = 3
    conv0_w = u(ks[0], (3,), 1.0 / np.sqrt(3.0))
    conv0_b = u(ks[1], (), 1.0 / np.sqrt(3.0))
    # DynamicModel Conv2d(1, 1, 1): fan_in = 1
    dyn_w = u(ks[2], (), 1.0)
    dyn_b = u(ks[3], (), 1.0)
    # BatchNorm2d(1), eval: affine + running stats (randomized for a non-trivial test)
    bn1_g = 1.0 + u(ks[4], (), 0.1)
    bn1_b = u(ks[5], (), 0.1)
    bn1_m = u(ks[6], (), 0.1)
    bn1_v = 1.0 + u(ks[7], (), 0.1)
    # SubModel
    sconv_w = u(ks[8], (), 1.0)
    sconv_b = u(ks[9], (), 1.0)
    sbn_g = 1.0 + u(ks[10], (), 0.1)
    sbn_b = u(ks[11], (), 0.1)
    sbn_m = u(ks[12], (), 0.1)
    sbn_v = 1.0 + u(ks[13], (), 0.1)
    sconv1_w = u(ks[14], (), 1.0)
    sconv1_b = u(ks[15], (), 1.0)
    # LayerNorm([1, H, W])
    ln_w = 1.0 + u(ks[16], (H, W), 0.1)
    ln_b = u(ks[17], (H, W), 0.1)
    # Linear(H*W, 1)
    lin_bound = 1.0 / np.sqrt(float(H * W))
    lin_w = u(ks[18], (H * W,), lin_bound)
    lin_b = u(ks[19], (), lin_bound)

    def fold_bn(g, b, m, v):
        scale = g / jnp.sqrt(v + BN_EPS)
        return scale, b - m * scale

    bn1_scale, bn1_shift = fold_bn(bn1_g, bn1_b, bn1_m, bn1_v)
    sbn_scale, sbn_shift = fold_bn(sbn_g, sbn_b, sbn_m, sbn_v)

    scalars = jnp.stack([
        conv0_w[0], conv0_w[1], conv0_w[2], conv0_b,
        dyn_w, dyn_b, bn1_scale, bn1_shift,
        sconv_w, sconv_b, sbn_scale, sbn_shift,
        sconv1_w, sconv1_b, lin_b,
    ]).astype(jnp.float32)

    return dict(
        scalars=scalars, ln_w=ln_w, ln_b=ln_b, lin_w_2d=lin_w.reshape(H, W),
        # raw parameters kept for the pure-JAX reference
        conv0_w=conv0_w, conv0_b=conv0_b, dyn_w=dyn_w, dyn_b=dyn_b,
        bn1=(bn1_g, bn1_b, bn1_m, bn1_v), sconv=(sconv_w, sconv_b),
        sbn=(sbn_g, sbn_b, sbn_m, sbn_v), sconv1=(sconv1_w, sconv1_b),
        lin_w=lin_w, lin_b=lin_b,
    )


# ----------------------------- Pure-JAX reference (for verification) -----------------------------
def _ref_forward(p, x):
    # conv: Conv2d(3, 1, 1)
    y = jnp.einsum('nchw,c->nhw', x, p["conv0_w"])[:, None, :, :] + p["conv0_b"]
    # dyn: Conv2d(1, 1, 1)
    y = y * p["dyn_w"] + p["dyn_b"]
    # bn (eval)
    g, b, m, v = p["bn1"]
    y = (y - m) / jnp.sqrt(v + BN_EPS) * g + b
    # sub.conv
    cw, cb = p["sconv"]
    y = y * cw + cb
    # sub.bn (eval)
    g, b, m, v = p["sbn"]
    y = (y - m) / jnp.sqrt(v + BN_EPS) * g + b
    # sub.relu
    y = jnp.maximum(y, 0.0)
    # sub.conv1
    cw, cb = p["sconv1"]
    y = y * cw + cb
    # sub.norm: LayerNorm([1, H, W])
    mu = jnp.mean(y, axis=(1, 2, 3), keepdims=True)
    var = jnp.mean((y - mu) ** 2, axis=(1, 2, 3), keepdims=True)
    y = (y - mu) / jnp.sqrt(var + LN_EPS) * p["ln_w"][None, None] + p["ln_b"][None, None]
    # fp32: x + x (channel dim == 1)
    y = y + y
    # view(1, -1) + Linear(H*W, 1)
    flat = y.reshape(1, -1)
    return flat @ p["lin_w"].reshape(-1, 1) + p["lin_b"]


if __name__ == "__main__":
    key = jax.random.PRNGKey(0)
    pkey, xkey = jax.random.split(key)
    params = init_params(pkey)
    x = jax.random.normal(xkey, (1, C_IN, H, W), jnp.float32)

    out = dynamic_control_model_forward(params, x)
    out = jax.block_until_ready(out)

    ref = _ref_forward(params, x)
    assert out.shape == (1, 1)
    assert np.allclose(np.asarray(out), np.asarray(ref), atol=1e-3, rtol=1e-3), (
        np.asarray(out), np.asarray(ref))
    print("KERNEL_OK")
</pallas_src>

<mosaic_0001>
module attributes {stable_mosaic.version = 11 : i64} {
  func.func @_fused_forward_kernel(%arg0: memref<15xf32, #tpu.memory_space<smem>>, %arg1: memref<3x128x128xf32, #tpu.memory_space<vmem>>, %arg2: memref<128x128xf32, #tpu.memory_space<vmem>>, %arg3: memref<128x128xf32, #tpu.memory_space<vmem>>, %arg4: memref<128x128xf32, #tpu.memory_space<vmem>>, %arg5: memref<1x128xf32, #tpu.memory_space<vmem>>) attributes {dimension_semantics = [], scalar_prefetch = 0 : i64, scratch_operands = 0 : i64, tpu.core_type = #tpu.core_type<tc>} {
    %c0 = arith.constant 0 : index
    %c0_0 = arith.constant 0 : index
    %c0_1 = arith.constant 0 : index
    %0 = vector.load %arg1[%c0, %c0_0, %c0_1] : memref<3x128x128xf32, #tpu.memory_space<vmem>>, vector<1x128x128xf32>
    %1 = vector.shape_cast %0 : vector<1x128x128xf32> to vector<128x128xf32>
    %c0_2 = arith.constant 0 : index
    %2 = memref.load %arg0[%c0_2] : memref<15xf32, #tpu.memory_space<smem>>
    %3 = vector.broadcast %2 : f32 to vector<128x128xf32>
    %4 = arith.mulf %1, %3 : vector<128x128xf32>
    %c1 = arith.constant 1 : index
    %c0_3 = arith.constant 0 : index
    %c0_4 = arith.constant 0 : index
    %5 = vector.load %arg1[%c1, %c0_3, %c0_4] : memref<3x128x128xf32, #tpu.memory_space<vmem>>, vector<1x128x128xf32>
    %6 = vector.shape_cast %5 : vector<1x128x128xf32> to vector<128x128xf32>
    %c1_5 = arith.constant 1 : index
    %7 = memref.load %arg0[%c1_5] : memref<15xf32, #tpu.memory_space<smem>>
    %8 = vector.broadcast %7 : f32 to vector<128x128xf32>
    %9 = arith.mulf %6, %8 : vector<128x128xf32>
    %10 = arith.addf %4, %9 : vector<128x128xf32>
    %c2 = arith.constant 2 : index
    %c0_6 = arith.constant 0 : index
    %c0_7 = arith.constant 0 : index
    %11 = vector.load %arg1[%c2, %c0_6, %c0_7] : memref<3x128x128xf32, #tpu.memory_space<vmem>>, vector<1x128x128xf32>
    %12 = vector.shape_cast %11 : vector<1x128x128xf32> to vector<128x128xf32>
    %c2_8 = arith.constant 2 : index
    %13 = memref.load %arg0[%c2_8] : memref<15xf32, #tpu.memory_space<smem>>
    %14 = vector.broadcast %13 : f32 to vector<128x128xf32>
    %15 = arith.mulf %12, %14 : vector<128x128xf32>
    %16 = arith.addf %10, %15 : vector<128x128xf32>
    %c3 = arith.constant 3 : index
    %17 = memref.load %arg0[%c3] : memref<15xf32, #tpu.memory_space<smem>>
    %18 = vector.broadcast %17 : f32 to vector<128x128xf32>
    %19 = arith.addf %16, %18 : vector<128x128xf32>
    %c4 = arith.constant 4 : index
    %20 = memref.load %arg0[%c4] : memref<15xf32, #tpu.memory_space<smem>>
    %21 = vector.broadcast %20 : f32 to vector<128x128xf32>
    %22 = arith.mulf %19, %21 : vector<128x128xf32>
    %c5 = arith.constant 5 : index
    %23 = memref.load %arg0[%c5] : memref<15xf32, #tpu.memory_space<smem>>
    %24 = vector.broadcast %23 : f32 to vector<128x128xf32>
    %25 = arith.addf %22, %24 : vector<128x128xf32>
    %c6 = arith.constant 6 : index
    %26 = memref.load %arg0[%c6] : memref<15xf32, #tpu.memory_space<smem>>
    %27 = vector.broadcast %26 : f32 to vector<128x128xf32>
    %28 = arith.mulf %25, %27 : vector<128x128xf32>
    %c7 = arith.constant 7 : index
    %29 = memref.load %arg0[%c7] : memref<15xf32, #tpu.memory_space<smem>>
    %30 = vector.broadcast %29 : f32 to vector<128x128xf32>
    %31 = arith.addf %28, %30 : vector<128x128xf32>
    %c8 = arith.constant 8 : index
    %32 = memref.load %arg0[%c8] : memref<15xf32, #tpu.memory_space<smem>>
    %33 = vector.broadcast %32 : f32 to vector<128x128xf32>
    %34 = arith.mulf %31, %33 : vector<128x128xf32>
    %c9 = arith.constant 9 : index
    %35 = memref.load %arg0[%c9] : memref<15xf32, #tpu.memory_space<smem>>
    %36 = vector.broadcast %35 : f32 to vector<128x128xf32>
    %37 = arith.addf %34, %36 : vector<128x128xf32>
    %c10 = arith.constant 10 : index
    %38 = memref.load %arg0[%c10] : memref<15xf32, #tpu.memory_space<smem>>
    %39 = vector.broadcast %38 : f32 to vector<128x128xf32>
    %40 = arith.mulf %37, %39 : vector<128x128xf32>
    %c11 = arith.constant 11 : index
    %41 = memref.load %arg0[%c11] : memref<15xf32, #tpu.memory_space<smem>>
    %42 = vector.broadcast %41 : f32 to vector<128x128xf32>
    %43 = arith.addf %40, %42 : vector<128x128xf32>
    %cst = arith.constant 0.000000e+00 : f32
    %44 = vector.broadcast %cst : f32 to vector<128x128xf32>
    %45 = arith.maximumf %43, %44 : vector<128x128xf32>
    %c12 = arith.constant 12 : index
    %46 = memref.load %arg0[%c12] : memref<15xf32, #tpu.memory_space<smem>>
    %47 = vector.broadcast %46 : f32 to vector<128x128xf32>
    %48 = arith.mulf %45, %47 : vector<128x128xf32>
    %c13 = arith.constant 13 : index
    %49 = memref.load %arg0[%c13] : memref<15xf32, #tpu.memory_space<smem>>
    %50 = vector.broadcast %49 : f32 to vector<128x128xf32>
    %51 = arith.addf %48, %50 : vector<128x128xf32>
    %cst_9 = arith.constant dense<0.000000e+00> : vector<128xf32>
    %52 = vector.multi_reduction <add>, %51, %cst_9 [1] : vector<128x128xf32> to vector<128xf32>
    %53 = vector.shape_cast %52 : vector<128xf32> to vector<128x1xf32>
    %cst_10 = arith.constant dense<0.000000e+00> : vector<1xf32>
    %54 = vector.multi_reduction <add>, %53, %cst_10 [0] : vector<128x1xf32> to vector<1xf32>
    %55 = vector.shape_cast %54 : vector<1xf32> to vector<1x1xf32>
    %cst_11 = arith.constant 6.10351563E-5 : f32
    %56 = vector.broadcast %cst_11 : f32 to vector<1x1xf32>
    %57 = arith.mulf %55, %56 : vector<1x1xf32>
    %58 = vector.broadcast %57 : vector<1x1xf32> to vector<128x128xf32>
    %59 = arith.subf %51, %58 : vector<128x128xf32>
    %60 = arith.mulf %59, %59 : vector<128x128xf32>
    %cst_12 = arith.constant dense<0.000000e+00> : vector<128xf32>
    %61 = vector.multi_reduction <add>, %60, %cst_12 [1] : vector<128x128xf32> to vector<128xf32>
    %62 = vector.shape_cast %61 : vector<128xf32> to vector<128x1xf32>
    %cst_13 = arith.constant dense<0.000000e+00> : vector<1xf32>
    %63 = vector.multi_reduction <add>, %62, %cst_13 [0] : vector<128x1xf32> to vector<1xf32>
    %64 = vector.shape_cast %63 : vector<1xf32> to vector<1x1xf32>
    %cst_14 = arith.constant 6.10351563E-5 : f32
    %65 = vector.broadcast %cst_14 : f32 to vector<1x1xf32>
    %66 = arith.mulf %64, %65 : vector<1x1xf32>
    %cst_15 = arith.constant 9.99999974E-6 : f32
    %67 = vector.broadcast %cst_15 : f32 to vector<1x1xf32>
    %68 = arith.addf %66, %67 : vector<1x1xf32>
    %69 = math.rsqrt %68 : vector<1x1xf32>
    %70 = vector.broadcast %69 : vector<1x1xf32> to vector<128x128xf32>
    %71 = arith.mulf %59, %70 : vector<128x128xf32>
    %c0_16 = arith.constant 0 : index
    %c0_17 = arith.constant 0 : index
    %72 = vector.load %arg2[%c0_16, %c0_17] : memref<128x128xf32, #tpu.memory_space<vmem>>, vector<128x128xf32>
    %73 = arith.mulf %71, %72 : vector<128x128xf32>
    %c0_18 = arith.constant 0 : index
    %c0_19 = arith.constant 0 : index
    %74 = vector.load %arg3[%c0_18, %c0_19] : memref<128x128xf32, #tpu.memory_space<vmem>>, vector<128x128xf32>
    %75 = arith.addf %73, %74 : vector<128x128xf32>
    %76 = arith.addf %75, %75 : vector<128x128xf32>
    %c0_20 = arith.constant 0 : index
    %c0_21 = arith.constant 0 : index
    %77 = vector.load %arg4[%c0_20, %c0_21] : memref<128x128xf32, #tpu.memory_space<vmem>>, vector<128x128xf32>
    %78 = arith.mulf %76, %77 : vector<128x128xf32>
    %cst_22 = arith.constant dense<0.000000e+00> : vector<128xf32>
    %79 = vector.multi_reduction <add>, %78, %cst_22 [1] : vector<128x128xf32> to vector<128xf32>
    %80 = vector.shape_cast %79 : vector<128xf32> to vector<128x1xf32>
    %cst_23 = arith.constant dense<0.000000e+00> : vector<1xf32>
    %81 = vector.multi_reduction <add>, %80, %cst_23 [0] : vector<128x1xf32> to vector<1xf32>
    %82 = vector.shape_cast %81 : vector<1xf32> to vector<1x1xf32>
    %c14 = arith.constant 14 : index
    %83 = memref.load %arg0[%c14] : memref<15xf32, #tpu.memory_space<smem>>
    %84 = vector.broadcast %83 : f32 to vector<1x1xf32>
    %85 = arith.addf %82, %84 : vector<1x1xf32>
    %86 = vector.shape_cast %85 : vector<1x1xf32> to vector<1x1xf32>
    %87 = vector.broadcast %86 : vector<1x1xf32> to vector<1x128xf32>
    %c0_24 = arith.constant 0 : index
    %c0_25 = arith.constant 0 : index
    %88 = vector.load %arg5[%c0_24, %c0_25] : memref<1x128xf32, #tpu.memory_space<vmem>>, vector<1x128xf32>
    tpu.vector_store %arg5[%c0_24, %c0_25], %87 {strides = array<i32>} : memref<1x128xf32, #tpu.memory_space<vmem>>, vector<1x128xf32>,
    return
  }
}

</mosaic_0001>

<bundles_post_ra>
// kernel: tpu_custom_call.1
= control target key start
LH: loop header
LB: loop body
LE: loop exit
PB: predicated region body
PF: predicated region fallthrough
CT: control target
= control target key end

     0   :  { %10 = vsyncpa [#allocation5], 0  ;;  %s1484_s0 = inlined_call_operand.hbm [shape: f32[15], index: 0, kind: input, shape index: {}]   ;;  %s1485_s1 = inlined_call_operand.hbm [shape: f32[3,128,128], index: 1, kind: input, shape index: {}]   ;;  %s1486_s2 = inlined_call_operand.hbm [shape: f32[128,128], index: 2, kind: input, shape index: {}]   ;;  %s1487_s3 = inlined_call_operand.hbm [shape: f32[128,128], index: 3, kind: input, shape index: {}]   ;;  %s1488_s4 = inlined_call_operand.hbm [shape: f32[128,128], index: 4, kind: input, shape index: {}]   ;;  %s1489_s5 = inlined_call_operand.hbm [shape: f32[1,128], index: 5, kind: output, shape index: {}]  }
   0x1   :  { %11 = vsyncpa [#allocation3], 0 }
   0x2   :  { %12 = vsyncpa [#allocation8], 0 }
   0x3   :  { %13 = vsyncpa [#allocation11], 0 }
   0x4   :  { %14 = vsyncpa [#allocation4], 0  ;;  %s936_s18 = smov [#allocation7]   ;;  %s937_s20 = smov [#allocation6]  }
   0x5   :  { %s40_s19 = sshll.u32 %s936_s18, 4  ;;  %s28_s21 = sshll.u32 %s937_s20, 4  ;;  %s41_s19 = int_to_ptr.vmem [resolvable:$true] %s40_s19  ;;  %s29_s21 = int_to_ptr.vmem [resolvable:$true] %s28_s21 }
   0x6   :  { %s806_s24 = scalar_lea.hbm %s1486_s2, 2048 }
   0x7   :  { %p807_p0 = scmp.ne.s32.totalorder %s1486_s2, %s806_s24  ;;  %p810_p1 = scmp.lt.u32.totalorder %s806_s24, %s1486_s2 }
   0x9   :  { %p812_p2 = pnand %p810_p1, %p807_p0 }
   0xb   :  { %815 = shalt.err (!%p812_p2)
}
   0xc   :  { %s816_s29 = scalar_lea.vmem %s41_s19, 2048  ;;  %p821_p4 = scmp.lt.s32.totalorder %s41_s19, %s41_s19 }
   0xd   :  { %p817_p3 = scmp.ne.s32.totalorder %s41_s19, %s816_s29  ;;  %p822_p5 = scmp.lt.s32.totalorder %s816_s29, %s816_s29 }
   0xf   :  { %p823_p6 = por %p822_p5, %p821_p4 }
  0x11   :  { %p824_p7 = pnand %p823_p6, %p817_p3 }
  0x13   :  { %827 = shalt.err (!%p824_p7)
}
  0x14   :  { %s938_s30 = smov 128   ;;  %s939_s6 = smov 8  }
  0x15   :  { %46 = dma.hbm_to_vmem [thread:$0]  %s1486_s2, 2048, %s41_s19, [#allocation8], %s938_s30, %s938_s30, %s939_s6  }
  0x16   :  { %s828_s11 = scalar_lea.hbm %s1484_s0, 16 }
  0x17   :  { %p829_p8 = scmp.ne.s32.totalorder %s1484_s0, %s828_s11  ;;  %p832_p9 = scmp.lt.u32.totalorder %s828_s11, %s1484_s0 }
  0x19   :  { %p834_p10 = pnand %p832_p9, %p829_p8 }
  0x1b   :  { %837 = shalt.err (!%p834_p10)
}
  0x1c   :  { %s940_s16 = smov [#allocation2]   ;;  %s838_s20 = scalar_lea.hbm %s1485_s1, 6144 }
  0x1d   :  { %22 = dma.hbm_to_smem %s1484_s0, 16, %s940_s16, [#allocation5]  }
  0x1e   :  { %p839_p11 = scmp.ne.s32.totalorder %s1485_s1, %s838_s20  ;;  %p842_p12 = scmp.lt.u32.totalorder %s838_s20, %s1485_s1 }
  0x20   :  { %p844_p13 = pnand %p842_p12, %p839_p11 }
  0x22   :  { %847 = shalt.err (!%p844_p13)
}
  0x23   :  { %s848_s26 = scalar_lea.vmem %s29_s21, 6144  ;;  %p853_p1 = scmp.lt.s32.totalorder %s29_s21, %s29_s21 }
  0x24   :  { %p849_p0 = scmp.ne.s32.totalorder %s29_s21, %s848_s26  ;;  %p854_p2 = scmp.lt.s32.totalorder %s848_s26, %s848_s26 }
  0x26   :  { %p855_p3 = por %p854_p2, %p853_p1 }
  0x28   :  { %p856_p4 = pnand %p855_p3, %p849_p0 }
  0x2a   :  { %859 = shalt.err (!%p856_p4)
}
  0x2b   :  { %34 = dma.hbm_to_vmem [thread:$0]  %s1485_s1, 6144, %s29_s21, [#allocation3], %s938_s30, %s938_s30, %s939_s6  }
  0x2c   :  { %s941_s28 = smov [#allocation9]   ;;  %s942_s7 = smov [#allocation10]  }
  0x2d   :  { %s52_s29 = sshll.u32 %s941_s28, 4  ;;  %s64_s8 = sshll.u32 %s942_s7, 4  ;;  %s53_s29 = int_to_ptr.vmem [resolvable:$true] %s52_s29  ;;  %s65_s8 = int_to_ptr.vmem [resolvable:$true] %s64_s8 }
  0x2e   :  { %s860_s11 = scalar_lea.hbm %s1487_s3, 2048 }
  0x2f   :  { %p861_p5 = scmp.ne.s32.totalorder %s1487_s3, %s860_s11  ;;  %p864_p6 = scmp.lt.u32.totalorder %s860_s11, %s1487_s3 }
  0x31   :  { %p866_p7 = pnand %p864_p6, %p861_p5 }
  0x33   :  { %869 = shalt.err (!%p866_p7)
}
  0x34   :  { %s870_s1 = scalar_lea.vmem %s53_s29, 2048  ;;  %p875_p9 = scmp.lt.s32.totalorder %s53_s29, %s53_s29 }
  0x35   :  { %p871_p8 = scmp.ne.s32.totalorder %s53_s29, %s870_s1  ;;  %p876_p10 = scmp.lt.s32.totalorder %s870_s1, %s870_s1 }
  0x37   :  { %p877_p11 = por %p876_p10, %p875_p9 }
  0x39   :  { %p878_p12 = pnand %p877_p11, %p871_p8 }
  0x3b   :  { %881 = shalt.err (!%p878_p12)
}
  0x3c   :  { %58 = dma.hbm_to_vmem [thread:$0]  %s1487_s3, 2048, %s53_s29, [#allocation8], %s938_s30, %s938_s30, %s939_s6  }
  0x3d   :  { %s882_s2 = scalar_lea.hbm %s1488_s4, 2048 }
  0x3e   :  { %p883_p13 = scmp.ne.s32.totalorder %s1488_s4, %s882_s2  ;;  %p886_p0 = scmp.lt.u32.totalorder %s882_s2, %s1488_s4 }
  0x40   :  { %p888_p1 = pnand %p886_p0, %p883_p13 }
  0x42   :  { %891 = shalt.err (!%p888_p1)
}
  0x43   :  { %s892_s24 = scalar_lea.vmem %s65_s8, 2048  ;;  %p897_p3 = scmp.lt.s32.totalorder %s65_s8, %s65_s8 }
  0x44   :  { %p893_p2 = scmp.ne.s32.totalorder %s65_s8, %s892_s24  ;;  %p898_p4 = scmp.lt.s32.totalorder %s892_s24, %s892_s24 }
  0x46   :  { %p899_p5 = por %p898_p4, %p897_p3 }
  0x48   :  { %p900_p6 = pnand %p899_p5, %p893_p2 }
  0x4a   :  { %903 = shalt.err (!%p900_p6)
}
  0x4b   :  { %70 = dma.hbm_to_vmem [thread:$0]  %s1488_s4, 2048, %s65_s8, [#allocation11], %s938_s30, %s938_s30, %s939_s6  }
  0x4c   :  { %926 = dma.done.wait [#allocation5], 16  }
  0x4d   :  { %927 = vsyncadd [#allocation5], 4294967280 }
  0x4e   :  { %928 = dma.done.wait [#allocation3], 6144  }
  0x4f   :  { %929 = vsyncadd [#allocation3], 4294961152 }
  0x50   :  { %930 = dma.done.wait [#allocation8], 4096  }
  0x51   :  { %931 = vsyncadd [#allocation8], 4294963200 }
  0x52   :  { %932 = dma.done.wait [#allocation11], 2048  }
  0x53   :  { %933 = vsyncadd [#allocation11], 4294965248 }
  0x54   :  { %86 = sfence }
  0x55   :  { %s103_s26 = sld [smem:[#allocation2]]  ;;  %s782_s0 = sld [smem:[#allocation2 + $0x1]]  ;;  %v87_v0 = vld [vmem:[#allocation6] sm:$0xff]  ;;  %v89_v3 = vld [vmem:[#allocation6 + $0x10] sm:$0xff]  ;;  %v88_v12 = vld [vmem:[#allocation6 + $0x8] sm:$0xff] }
  0x56   :  { %s783_s27 = sld [smem:[#allocation2 + $0x2]]  ;;  %s784_s28 = sld [smem:[#allocation2 + $0x3]]  ;;  %v122_v1 = vld [vmem:[#allocation6 + $0x80] sm:$0xff]  ;;  %v124_v6 = vld [vmem:[#allocation6 + $0x90] sm:$0xff]  ;;  %v123_v21 = vld [vmem:[#allocation6 + $0x88] sm:$0xff] }
  0x57   :  { %s785_s29 = sld [smem:[#allocation2 + $0x4]]  ;;  %s786_s7 = sld [smem:[#allocation2 + $0x5]]  ;;  %v173_v2 = vld [vmem:[#allocation6 + $0x100] sm:$0xff]  ;;  %v175_v11 = vld [vmem:[#allocation6 + $0x110] sm:$0xff]  ;;  %v174_v22 = vld [vmem:[#allocation6 + $0x108] sm:$0xff] }
  0x58   :  { %s787_s9 = sld [smem:[#allocation2 + $0x6]]  ;;  %s788_s10 = sld [smem:[#allocation2 + $0x7]]  ;;  %v90_v27 = vld [vmem:[#allocation6 + $0x18] sm:$0xff]  ;;  %v91_v34 = vld [vmem:[#allocation6 + $0x20] sm:$0xff]  ;;  %v92_v45 = vld [vmem:[#allocation6 + $0x28] sm:$0xff] }
  0x59   :  { %s789_s4 = sld [smem:[#allocation2 + $0x8]]  ;;  %s790_s30 = sld [smem:[#allocation2 + $0x9]]  ;;  %v125_v28 = vld [vmem:[#allocation6 + $0x98] sm:$0xff]  ;;  %v126_v35 = vld [vmem:[#allocation6 + $0xa0] sm:$0xff]  ;;  %v127_v46 = vld [vmem:[#allocation6 + $0xa8] sm:$0xff] }
  0x5a   :  { %s1046_s6 = sld [smem:[#allocation2 + $0xa]]  ;;  %s1048_s8 = sld [smem:[#allocation2 + $0xb]]  ;;  %v176_v33 = vld [vmem:[#allocation6 + $0x118] sm:$0xff]  ;;  %v177_v40 = vld [vmem:[#allocation6 + $0x120] sm:$0xff]  ;;  %v178_v51 = vld [vmem:[#allocation6 + $0x128] sm:$0xff] }
  0x5b   :  { %v1050_v4 = vstv %s103_s26  ;;  %v1052_v5 = vstv %s782_s0  ;;  %s1054_s11 = sld [smem:[#allocation2 + $0xc]]  ;;  %s1056_s12 = sld [smem:[#allocation2 + $0xd]]  ;;  %v93_v56 = vld [vmem:[#allocation6 + $0x30] sm:$0xff] }
  0x5c   :  { %v105_v7 = vmul.f32 %v1050_v4, %v87_v0  ;;  %v140_v8 = vmul.f32 %v1052_v5, %v122_v1  ;;  %v1060_v9 = vstv %s783_s27  ;;  %v1062_v10 = vstv %s784_s28  ;;  %v128_v61 = vld [vmem:[#allocation6 + $0xb0] sm:$0xff]  ;;  %s795_s13 = sld [smem:[#allocation2 + $0xe]]  ;;  %s943_s14 = smov [#allocation12]  }
  0x5d   :  { %v191_v13 = vmul.f32 %v1060_v9, %v173_v2  ;;  %v1065_v14 = vstv %s785_s29  ;;  %v1067_v15 = vstv %s786_s7  ;;  %v107_v16 = vmul.f32 %v1050_v4, %v89_v3  ;;  %v179_v2 = vld [vmem:[#allocation6 + $0x130] sm:$0xff]  ;;  %s770_s15 = sshll.u32 %s943_s14, 4  ;;  %s771_s15 = int_to_ptr.vmem [resolvable:$true] %s770_s15 }
  0x5e   :  { %v156_v17 = vadd.f32 %v140_v8, %v105_v7  ;;  %v1070_v18 = vstv %s787_s9  ;;  %v1072_v19 = vstv %s788_s10  ;;  %v142_v20 = vmul.f32 %v1052_v5, %v124_v6  ;;  %s904_s1 = scalar_lea.vmem %s771_s15, 16  ;;  %s908_s21 = scalar_lea.vmem %s771_s15, 32 }
  0x5f   :  { %v1075_v23 = vstv %s789_s4  ;;  %v1077_v24 = vstv %s790_s30  ;;  %v193_v25 = vmul.f32 %v1060_v9, %v175_v11  ;;  %v106_v26 = vmul.f32 %v1050_v4, %v88_v12  ;;  %p905_p7 = scmp.ne.s32.totalorder %s771_s15, %s904_s1  ;;  %p909_p8 = scmp.lt.s32.totalorder %s771_s15, %s771_s15 }
  0x60   :  { %v207_v29 = vadd.f32 %v191_v13, %v156_v17  ;;  %v1082_v30 = vstv %s1046_s6  ;;  %v1085_v31 = vstv %s1048_s8  ;;  %v158_v32 = vadd.f32 %v142_v20, %v107_v16  ;;  %v94_v17 = vld [vmem:[#allocation6 + $0x38] sm:$0xff]  ;;  %p910_p9 = scmp.lt.s32.totalorder %s908_s21, %s904_s1 }
  0x61   :  { %v1088_v36 = vstv %s1054_s11  ;;  %v1091_v37 = vstv %s1056_s12  ;;  %v141_v38 = vmul.f32 %v1052_v5, %v123_v21  ;;  %v192_v39 = vmul.f32 %v1060_v9, %v174_v22 }
  0x62   :  { %v225_v41 = vadd.f32 %v1062_v10, %v207_v29  ;;  %v209_v42 = vadd.f32 %v193_v25, %v158_v32  ;;  %v108_v43 = vmul.f32 %v1050_v4, %v90_v27  ;;  %v143_v44 = vmul.f32 %v1052_v5, %v125_v28  ;;  %v129_v32 = vld [vmem:[#allocation6 + $0xb8] sm:$0xff]  ;;  %p911_p10 = por %p910_p9, %p909_p8 }
  0x63   :  { %v157_v47 = vadd.f32 %v141_v38, %v106_v26  ;;  %v194_v48 = vmul.f32 %v1060_v9, %v176_v33  ;;  %v109_v49 = vmul.f32 %v1050_v4, %v91_v34  ;;  %v144_v50 = vmul.f32 %v1052_v5, %v126_v35 }
  0x64   :  { %v243_v52 = vmul.f32 %v1065_v14, %v225_v41  ;;  %v227_v53 = vadd.f32 %v1062_v10, %v209_v42  ;;  %v159_v54 = vadd.f32 %v143_v44, %v108_v43  ;;  %v195_v55 = vmul.f32 %v1060_v9, %v177_v40  ;;  %p912_p11 = pnand %p911_p10, %p905_p7 }
  0x65   :  { %v208_v57 = vadd.f32 %v192_v39, %v157_v47  ;;  %v160_v58 = vadd.f32 %v144_v50, %v109_v49  ;;  %v110_v59 = vmul.f32 %v1050_v4, %v92_v45  ;;  %v145_v60 = vmul.f32 %v1052_v5, %v127_v46 }
  0x66   :  { %v261_v62 = vadd.f32 %v1067_v15, %v243_v52  ;;  %v245_v63 = vmul.f32 %v1065_v14, %v227_v53  ;;  %v210_v0 = vadd.f32 %v194_v48, %v159_v54  ;;  %v196_v1 = vmul.f32 %v1060_v9, %v178_v51  ;;  %v180_v51 = vld [vmem:[#allocation6 + $0x138] sm:$0xff] }
  0x67   :  { %v226_v3 = vadd.f32 %v1062_v10, %v208_v57  ;;  %v211_v6 = vadd.f32 %v195_v55, %v160_v58  ;;  %v161_v7 = vadd.f32 %v145_v60, %v110_v59  ;;  %v111_v8 = vmul.f32 %v1050_v4, %v93_v56 }
  0x68   :  { %v279_v11 = vmul.f32 %v1070_v18, %v261_v62  ;;  %v263_v12 = vadd.f32 %v1067_v15, %v245_v63  ;;  %v228_v13 = vadd.f32 %v1062_v10, %v210_v0  ;;  %v146_v16 = vmul.f32 %v1052_v5, %v128_v61 }
  0x69   :  { %v244_v20 = vmul.f32 %v1065_v14, %v226_v3  ;;  %v229_v21 = vadd.f32 %v1062_v10, %v211_v6  ;;  %v212_v22 = vadd.f32 %v196_v1, %v161_v7  ;;  %v197_v25 = vmul.f32 %v1060_v9, %v179_v2 }
  0x6a   :  { %v297_v26 = vadd.f32 %v1072_v19, %v279_v11  ;;  %v281_v27 = vmul.f32 %v1070_v18, %v263_v12  ;;  %v246_v28 = vmul.f32 %v1065_v14, %v228_v13  ;;  %v162_v29 = vadd.f32 %v146_v16, %v111_v8 }
  0x6b   :  { %v262_v33 = vadd.f32 %v1067_v15, %v244_v20  ;;  %v247_v34 = vmul.f32 %v1065_v14, %v229_v21  ;;  %v230_v35 = vadd.f32 %v1062_v10, %v212_v22  ;;  %v112_v38 = vmul.f32 %v1050_v4, %v94_v17 }
  0x6c   :  { %v315_v39 = vmul.f32 %v1075_v23, %v297_v26  ;;  %v299_v40 = vadd.f32 %v1072_v19, %v281_v27  ;;  %v264_v41 = vadd.f32 %v1067_v15, %v246_v28  ;;  %v213_v42 = vadd.f32 %v197_v25, %v162_v29 }
  0x6d   :  { %v280_v43 = vmul.f32 %v1070_v18, %v262_v33  ;;  %v265_v44 = vadd.f32 %v1067_v15, %v247_v34  ;;  %v248_v45 = vmul.f32 %v1065_v14, %v230_v35  ;;  %v147_v46 = vmul.f32 %v1052_v5, %v129_v32 }
  0x6e   :  { %v333_v47 = vadd.f32 %v1077_v24, %v315_v39  ;;  %v317_v48 = vmul.f32 %v1075_v23, %v299_v40  ;;  %v282_v49 = vmul.f32 %v1070_v18, %v264_v41  ;;  %v231_v50 = vadd.f32 %v1062_v10, %v213_v42 }
  0x6f   :  { %v298_v52 = vadd.f32 %v1072_v19, %v280_v43  ;;  %v283_v53 = vmul.f32 %v1070_v18, %v265_v44  ;;  %v266_v54 = vadd.f32 %v1067_v15, %v248_v45  ;;  %v163_v55 = vadd.f32 %v147_v46, %v112_v38  ;;  %v95_v38 = vld [vmem:[#allocation6 + $0x40] sm:$0xff] }
  0x70   :  { %v351_v56 = vmul.f32 %v1082_v30, %v333_v47  ;;  %v335_v57 = vadd.f32 %v1077_v24, %v317_v48  ;;  %v300_v58 = vadd.f32 %v1072_v19, %v282_v49  ;;  %v249_v59 = vmul.f32 %v1065_v14, %v231_v50  ;;  %v130_v47 = vld [vmem:[#allocation6 + $0xc0] sm:$0xff] }
  0x71   :  { %v316_v60 = vmul.f32 %v1075_v23, %v298_v52  ;;  %v301_v61 = vadd.f32 %v1072_v19, %v283_v53  ;;  %v284_v62 = vmul.f32 %v1070_v18, %v266_v54  ;;  %v198_v63 = vmul.f32 %v1060_v9, %v180_v51  ;;  %v181_v48 = vld [vmem:[#allocation6 + $0x140] sm:$0xff] }
  0x72   :  { %v369_v0 = vadd.f32 %v1085_v31, %v351_v56  ;;  %v353_v1 = vmul.f32 %v1082_v30, %v335_v57  ;;  %v318_v2 = vmul.f32 %v1075_v23, %v300_v58  ;;  %v267_v3 = vadd.f32 %v1067_v15, %v249_v59  ;;  %v96_v57 = vld [vmem:[#allocation6 + $0x48] sm:$0xff] }
  0x73   :  { %v334_v6 = vadd.f32 %v1077_v24, %v316_v60  ;;  %v319_v7 = vmul.f32 %v1075_v23, %v301_v61  ;;  %v302_v8 = vadd.f32 %v1072_v19, %v284_v62  ;;  %v214_v11 = vadd.f32 %v198_v63, %v163_v55  ;;  %v131_v62 = vld [vmem:[#allocation6 + $0xc8] sm:$0xff] }
  0x74   :  { %v385_v12 = vmax.f32 %v369_v0, 0.0  ;;  %v371_v13 = vadd.f32 %v1085_v31, %v353_v1  ;;  %v336_v16 = vadd.f32 %v1077_v24, %v318_v2  ;;  %v285_v17 = vmul.f32 %v1070_v18, %v267_v3  ;;  %v182_v3 = vld [vmem:[#allocation6 + $0x148] sm:$0xff] }
  0x75   :  { %v352_v20 = vmul.f32 %v1082_v30, %v334_v6  ;;  %v337_v21 = vadd.f32 %v1077_v24, %v319_v7  ;;  %v320_v22 = vmul.f32 %v1075_v23, %v302_v8  ;;  %v232_v25 = vadd.f32 %v1062_v10, %v214_v11  ;;  %v97_v6 = vld [vmem:[#allocation6 + $0x50] sm:$0xff] }
  0x76   :  { %v403_v26 = vmul.f32 %v1088_v36, %v385_v12  ;;  %v387_v27 = vmax.f32 %v371_v13, 0.0  ;;  %v354_v28 = vmul.f32 %v1082_v30, %v336_v16  ;;  %v303_v29 = vadd.f32 %v1072_v19, %v285_v17  ;;  %v132_v13 = vld [vmem:[#allocation6 + $0xd0] sm:$0xff] }
  0x77   :  { %v370_v32 = vadd.f32 %v1085_v31, %v352_v20  ;;  %v355_v33 = vmul.f32 %v1082_v30, %v337_v21  ;;  %v338_v34 = vadd.f32 %v1077_v24, %v320_v22  ;;  %v250_v35 = vmul.f32 %v1065_v14, %v232_v25  ;;  %v183_v22 = vld [vmem:[#allocation6 + $0x150] sm:$0xff]  ;;  %v98_v25 = vld [vmem:[#allocation6 + $0x58] sm:$0xff] }
  0x78   :  { %v1169_v39 = vadd.f32 %v1091_v37, %v403_v26  ;;  %v405_v40 = vmul.f32 %v1088_v36, %v387_v27  ;;  %v372_v41 = vadd.f32 %v1085_v31, %v354_v28  ;;  %v321_v42 = vmul.f32 %v1075_v23, %v303_v29 }
  0x79   :  { %v386_v43 = vmax.f32 %v370_v32, 0.0  ;;  %v373_v44 = vadd.f32 %v1085_v31, %v355_v33  ;;  %v356_v45 = vmul.f32 %v1082_v30, %v338_v34  ;;  %v268_v46 = vadd.f32 %v1067_v15, %v250_v35  ;;  %v133_v32 = vld [vmem:[#allocation6 + $0xd8] sm:$0xff] }
  0x7a   :  { %437 = vadd.xlane.f32.xlu0 %v1169_v39  ;;  %v1179_v49 = vadd.f32 %v1091_v37, %v405_v40  ;;  %v388_v50 = vmax.f32 %v372_v41, 0.0  ;;  %v339_v51 = vadd.f32 %v1077_v24, %v321_v42  ;;  %v113_v52 = vmul.f32 %v1050_v4, %v95_v38  ;;  %v184_v40 = vld [vmem:[#allocation6 + $0x158] sm:$0xff]  ;;  %v99_v41 = vld [vmem:[#allocation6 + $0x60] sm:$0xff] }
  0x7b   :  { %v404_v53 = vmul.f32 %v1088_v36, %v386_v43  ;;  %v389_v54 = vmax.f32 %v373_v44, 0.0  ;;  %v374_v55 = vadd.f32 %v1085_v31, %v356_v45  ;;  %v286_v56 = vmul.f32 %v1070_v18, %v268_v46 }
  0x7c   :  { %441 = vadd.xlane.f32.xlu1 %v1179_v49  ;;  %v406_v58 = vmul.f32 %v1088_v36, %v388_v50  ;;  %v357_v59 = vmul.f32 %v1082_v30, %v339_v51  ;;  %v148_v60 = vmul.f32 %v1052_v5, %v130_v47  ;;  %v199_v61 = vmul.f32 %v1060_v9, %v181_v48  ;;  %v134_v51 = vld [vmem:[#allocation6 + $0xe0] sm:$0xff] }
  0x7d   :  { %v1192_v63 = vadd.f32 %v1091_v37, %v404_v53  ;;  %v407_v0 = vmul.f32 %v1088_v36, %v389_v54  ;;  %v390_v1 = vmax.f32 %v374_v55, 0.0  ;;  %v304_v2 = vadd.f32 %v1072_v19, %v286_v56  ;;  %v100_v53 = vld [vmem:[#allocation6 + $0x68] sm:$0xff] }
  0x7e   :  { %v1197_v7 = vadd.f32 %v1091_v37, %v406_v58  ;;  %v375_v8 = vadd.f32 %v1085_v31, %v357_v59  ;;  %v164_v11 = vadd.f32 %v148_v60, %v113_v52  ;;  %v114_v12 = vmul.f32 %v1050_v4, %v96_v57  ;;  %v185_v52 = vld [vmem:[#allocation6 + $0x160] sm:$0xff] }
  0x7f   :  { %439 = vadd.xlane.f32.xlu0 %v1192_v63  ;;  %v1203_v16 = vadd.f32 %v1091_v37, %v407_v0  ;;  %v408_v17 = vmul.f32 %v1088_v36, %v390_v1  ;;  %v322_v20 = vmul.f32 %v1075_v23, %v304_v2  ;;  %v149_v21 = vmul.f32 %v1052_v5, %v131_v62  ;;  %v135_v62 = vld [vmem:[#allocation6 + $0xe8] sm:$0xff] }
  0x80   :  { %443 = vadd.xlane.f32.xlu1 %v1197_v7  ;;  %v391_v26 = vmax.f32 %v375_v8, 0.0  ;;  %v215_v27 = vadd.f32 %v199_v61, %v164_v11  ;;  %v200_v28 = vmul.f32 %v1060_v9, %v182_v3  ;;  %v115_v29 = vmul.f32 %v1050_v4, %v97_v6  ;;  %v186_v0 = vld [vmem:[#allocation6 + $0x168] sm:$0xff] }
  0x81   :  { %v1212_v33 = vadd.f32 %v1091_v37, %v408_v17  ;;  %v340_v34 = vadd.f32 %v1077_v24, %v322_v20  ;;  %v165_v35 = vadd.f32 %v149_v21, %v114_v12  ;;  %v150_v38 = vmul.f32 %v1052_v5, %v132_v13  ;;  %v101_v17 = vld [vmem:[#allocation6 + $0x70] sm:$0xff] }
  0x82   :  { %v409_v42 = vmul.f32 %v1088_v36, %v391_v26  ;;  %v233_v43 = vadd.f32 %v1062_v10, %v215_v27  ;;  %v201_v44 = vmul.f32 %v1060_v9, %v183_v22  ;;  %v116_v45 = vmul.f32 %v1050_v4, %v98_v25 }
  0x83   :  { %445 = vadd.xlane.f32.xlu0 %v1203_v16  ;;  %v358_v46 = vmul.f32 %v1082_v30, %v340_v34  ;;  %v216_v47 = vadd.f32 %v200_v28, %v165_v35  ;;  %v166_v48 = vadd.f32 %v150_v38, %v115_v29  ;;  %v151_v50 = vmul.f32 %v1052_v5, %v133_v32  ;;  %v136_v32 = vld [vmem:[#allocation6 + $0xf0] sm:$0xff] }
  0x84   :  { %447 = vadd.xlane.f32.xlu1 %v1212_v33  ;;  %v1225_v54 = vadd.f32 %v1091_v37, %v409_v42  ;;  %v251_v55 = vmul.f32 %v1065_v14, %v233_v43  ;;  %v202_v56 = vmul.f32 %v1060_v9, %v184_v40  ;;  %v117_v57 = vmul.f32 %v1050_v4, %v99_v41  ;;  %v187_v41 = vld [vmem:[#allocation6 + $0x170] sm:$0xff] }
  0x85   :  { %v376_v58 = vadd.f32 %v1085_v31, %v358_v46  ;;  %v234_v59 = vadd.f32 %v1062_v10, %v216_v47  ;;  %v217_v60 = vadd.f32 %v201_v44, %v166_v48  ;;  %v167_v61 = vadd.f32 %v151_v50, %v116_v45 }
  0x86   :  { %v269_v1 = vadd.f32 %v1067_v15, %v251_v55  ;;  %v152_v2 = vmul.f32 %v1052_v5, %v134_v51  ;;  %v203_v3 = vmul.f32 %v1060_v9, %v185_v52  ;;  %v118_v6 = vmul.f32 %v1050_v4, %v100_v53  ;;  %v102_v51 = vld [vmem:[#allocation6 + $0x78] sm:$0xff] }
  0x87   :  { %449 = vadd.xlane.f32.xlu0 %v1225_v54  ;;  %v392_v8 = vmax.f32 %v376_v58, 0.0  ;;  %v252_v11 = vmul.f32 %v1065_v14, %v234_v59  ;;  %v235_v12 = vadd.f32 %v1062_v10, %v217_v60  ;;  %v218_v13 = vadd.f32 %v202_v56, %v167_v61  ;;  %v137_v61 = vld [vmem:[#allocation6 + $0xf8] sm:$0xff] }
  0x88   :  { %v287_v20 = vmul.f32 %v1070_v18, %v269_v1  ;;  %v168_v21 = vadd.f32 %v152_v2, %v117_v57  ;;  %v153_v22 = vmul.f32 %v1052_v5, %v135_v62  ;;  %v204_v25 = vmul.f32 %v1060_v9, %v186_v0 }
  0x89   :  { %v410_v26 = vmul.f32 %v1088_v36, %v392_v8  ;;  %v270_v27 = vadd.f32 %v1067_v15, %v252_v11  ;;  %v253_v28 = vmul.f32 %v1065_v14, %v235_v12  ;;  %v236_v29 = vadd.f32 %v1062_v10, %v218_v13 }
  0x8a   :  { %v305_v34 = vadd.f32 %v1072_v19, %v287_v20  ;;  %v219_v35 = vadd.f32 %v203_v3, %v168_v21  ;;  %v169_v38 = vadd.f32 %v153_v22, %v118_v6  ;;  %v119_v40 = vmul.f32 %v1050_v4, %v101_v17 }
  0x8b   :  { %v1249_v42 = vadd.f32 %v1091_v37, %v410_v26  ;;  %v288_v43 = vmul.f32 %v1070_v18, %v270_v27  ;;  %v271_v44 = vadd.f32 %v1067_v15, %v253_v28  ;;  %v254_v45 = vmul.f32 %v1065_v14, %v236_v29  ;;  %v188_v26 = vld [vmem:[#allocation6 + $0x178] sm:$0xff] }
  0x8c   :  { %v323_v46 = vmul.f32 %v1075_v23, %v305_v34  ;;  %v237_v47 = vadd.f32 %v1062_v10, %v219_v35  ;;  %v220_v48 = vadd.f32 %v204_v25, %v169_v38  ;;  %v154_v50 = vmul.f32 %v1052_v5, %v136_v32 }
  0x8d   :  { %451 = vadd.xlane.f32.xlu1 %v1249_v42  ;;  %v306_v52 = vadd.f32 %v1072_v19, %v288_v43  ;;  %v289_v53 = vmul.f32 %v1070_v18, %v271_v44  ;;  %v272_v55 = vadd.f32 %v1067_v15, %v254_v45  ;;  %v205_v56 = vmul.f32 %v1060_v9, %v187_v41 }
  0x8e   :  { %v341_v57 = vadd.f32 %v1077_v24, %v323_v46  ;;  %v255_v58 = vmul.f32 %v1065_v14, %v237_v47  ;;  %v238_v59 = vadd.f32 %v1062_v10, %v220_v48  ;;  %v170_v60 = vadd.f32 %v154_v50, %v119_v40 }
  0x8f   :  { %v324_v62 = vmul.f32 %v1075_v23, %v306_v52  ;;  %v307_v0 = vadd.f32 %v1072_v19, %v289_v53  ;;  %v290_v1 = vmul.f32 %v1070_v18, %v272_v55  ;;  %v120_v2 = vmul.f32 %v1050_v4, %v102_v51 }
  0x90   :  { %v359_v3 = vmul.f32 %v1082_v30, %v341_v57  ;;  %v273_v6 = vadd.f32 %v1067_v15, %v255_v58  ;;  %v256_v8 = vmul.f32 %v1065_v14, %v238_v59  ;;  %v221_v11 = vadd.f32 %v205_v56, %v170_v60 }
  0x91   :  { %v342_v12 = vadd.f32 %v1077_v24, %v324_v62  ;;  %v325_v13 = vmul.f32 %v1075_v23, %v307_v0  ;;  %v308_v17 = vadd.f32 %v1072_v19, %v290_v1  ;;  %v155_v20 = vmul.f32 %v1052_v5, %v137_v61 }
  0x92   :  { %v377_v21 = vadd.f32 %v1085_v31, %v359_v3  ;;  %v291_v22 = vmul.f32 %v1070_v18, %v273_v6  ;;  %v274_v4 = vadd.f32 %v1067_v15, %v256_v8  ;;  %v239_v25 = vadd.f32 %v1062_v10, %v221_v11 }
  0x93   :  { %v360_v27 = vmul.f32 %v1082_v30, %v342_v12  ;;  %v343_v28 = vadd.f32 %v1077_v24, %v325_v13  ;;  %v326_v29 = vmul.f32 %v1075_v23, %v308_v17  ;;  %v171_v32 = vadd.f32 %v155_v20, %v120_v2 }
  0x94   :  { %v393_v34 = vmax.f32 %v377_v21, 0.0  ;;  %v309_v35 = vadd.f32 %v1072_v19, %v291_v22  ;;  %v292_v5 = vmul.f32 %v1070_v18, %v274_v4  ;;  %v257_v38 = vmul.f32 %v1065_v14, %v239_v25 }
  0x95   :  { %v378_v40 = vadd.f32 %v1085_v31, %v360_v27  ;;  %v361_v41 = vmul.f32 %v1082_v30, %v343_v28  ;;  %v344_v43 = vadd.f32 %v1077_v24, %v326_v29  ;;  %v206_v44 = vmul.f32 %v1060_v9, %v188_v26 }
  0x96   :  { %v411_v45 = vmul.f32 %v1088_v36, %v393_v34  ;;  %v327_v46 = vmul.f32 %v1075_v23, %v309_v35  ;;  %v310_v47 = vadd.f32 %v1072_v19, %v292_v5  ;;  %v275_v48 = vadd.f32 %v1067_v15, %v257_v38 }
  0x97   :  { %v394_v50 = vmax.f32 %v378_v40, 0.0  ;;  %v379_v51 = vadd.f32 %v1085_v31, %v361_v41  ;;  %v362_v52 = vmul.f32 %v1082_v30, %v344_v43  ;;  %v222_v53 = vadd.f32 %v206_v44, %v171_v32 }
  0x98   :  { %v1297_v55 = vadd.f32 %v1091_v37, %v411_v45  ;;  %v345_v56 = vadd.f32 %v1077_v24, %v327_v46  ;;  %v328_v9 = vmul.f32 %v1075_v23, %v310_v47  ;;  %v293_v57 = vmul.f32 %v1070_v18, %v275_v48 }
  0x99   :  { %v412_v58 = vmul.f32 %v1088_v36, %v394_v50  ;;  %v395_v59 = vmax.f32 %v379_v51, 0.0  ;;  %v380_v60 = vadd.f32 %v1085_v31, %v362_v52  ;;  %v240_v61 = vadd.f32 %v1062_v10, %v222_v53 }
  0x9a   :  { %453 = vadd.xlane.f32.xlu0 %v1297_v55  ;;  %v363_v62 = vmul.f32 %v1082_v30, %v345_v56  ;;  %v346_v0 = vadd.f32 %v1077_v24, %v328_v9  ;;  %v311_v1 = vadd.f32 %v1072_v19, %v293_v57 }
  0x9b   :  { %v1310_v2 = vadd.f32 %v1091_v37, %v412_v58  ;;  %v413_v3 = vmul.f32 %v1088_v36, %v395_v59  ;;  %v396_v6 = vmax.f32 %v380_v60, 0.0  ;;  %v258_v8 = vmul.f32 %v1065_v14, %v240_v61 }
  0x9c   :  { %v381_v11 = vadd.f32 %v1085_v31, %v363_v62  ;;  %v364_v10 = vmul.f32 %v1082_v30, %v346_v0  ;;  %v329_v12 = vmul.f32 %v1075_v23, %v311_v1 }
  0x9d   :  { %455 = vadd.xlane.f32.xlu1 %v1310_v2  ;;  %v1319_v13 = vadd.f32 %v1091_v37, %v413_v3  ;;  %v414_v17 = vmul.f32 %v1088_v36, %v396_v6  ;;  %v276_v20 = vadd.f32 %v1067_v15, %v258_v8 }
  0x9e   :  { %v397_v21 = vmax.f32 %v381_v11, 0.0  ;;  %v382_v22 = vadd.f32 %v1085_v31, %v364_v10  ;;  %v347_v14 = vadd.f32 %v1077_v24, %v329_v12 }
  0x9f   :  { %457 = vadd.xlane.f32.xlu0 %v1319_v13  ;;  %v1327_v4 = vadd.f32 %v1091_v37, %v414_v17  ;;  %v294_v25 = vmul.f32 %v1070_v18, %v276_v20 }
  0xa0   :  { %v415_v26 = vmul.f32 %v1088_v36, %v397_v21  ;;  %v398_v27 = vmax.f32 %v382_v22, 0.0  ;;  %v365_v28 = vmul.f32 %v1082_v30, %v347_v14 }
  0xa1   :  { %459 = vadd.xlane.f32.xlu1 %v1327_v4  ;;  %v312_v15 = vadd.f32 %v1072_v19, %v294_v25 }
  0xa2   :  { %v1335_v29 = vadd.f32 %v1091_v37, %v415_v26  ;;  %v416_v32 = vmul.f32 %v1088_v36, %v398_v27  ;;  %v383_v34 = vadd.f32 %v1085_v31, %v365_v28 }
  0xa3   :  { %v330_v35 = vmul.f32 %v1075_v23, %v312_v15 }
  0xa4   :  { %461 = vadd.xlane.f32.xlu0 %v1335_v29  ;;  %v1342_v18 = vadd.f32 %v1091_v37, %v416_v32  ;;  %v399_v5 = vmax.f32 %v383_v34, 0.0 }
  0xa5   :  { %v348_v38 = vadd.f32 %v1077_v24, %v330_v35 }
  0xa6   :  { %463 = vadd.xlane.f32.xlu1 %v1342_v18  ;;  %v417_v19 = vmul.f32 %v1088_v36, %v399_v5 }
  0xa7   :  { %v366_v40 = vmul.f32 %v1082_v30, %v348_v38 }
  0xa8   :  { %v1349_v41 = vadd.f32 %v1091_v37, %v417_v19 }
  0xa9   :  { %v384_v43 = vadd.f32 %v1085_v31, %v366_v40 }
  0xaa   :  { %465 = vadd.xlane.f32.xlu0 %v1349_v41 }
  0xab   :  { %v400_v23 = vmax.f32 %v384_v43, 0.0 }
  0xad   :  { %v418_v44 = vmul.f32 %v1088_v36, %v400_v23 }
  0xaf   :  { %v1355_v45 = vadd.f32 %v1091_v37, %v418_v44 }
  0xb1   :  { %467 = vadd.xlane.f32.xlu1 %v1355_v45 }
 0x107   :  { %v438_v24 = vpop.xlane.xlu0 %437 }
 0x109   :  { %v442_v46 = vpop.xlane.xlu1 %441 }
 0x10c   :  { %v440_v47 = vpop.xlane.xlu0 %439 }
 0x10d   :  { %v469_v48 = vadd.f32 %v440_v47, %v438_v24  ;;  %v444_v50 = vpop.xlane.xlu1 %443 }
 0x10f   :  { %v470_v30 = vadd.f32 %v469_v48, %v442_v46 }
 0x110   :  { %v446_v52 = vpop.xlane.xlu0 %445 }
 0x111   :  { %v471_v51 = vadd.f32 %v470_v30, %v444_v50  ;;  %v448_v31 = vpop.xlane.xlu1 %447 }
 0x113   :  { %v472_v53 = vadd.f32 %v471_v51, %v446_v52 }
 0x114   :  { %v450_v9 = vpop.xlane.xlu0 %449 }
 0x115   :  { %v473_v56 = vadd.f32 %v472_v53, %v448_v31 }
 0x117   :  { %v474_v57 = vadd.f32 %v473_v56, %v450_v9 }
 0x11a   :  { %v452_v58 = vpop.xlane.xlu1 %451 }
 0x11b   :  { %v475_v36 = vadd.f32 %v474_v57, %v452_v58 }
 0x127   :  { %v454_v59 = vpop.xlane.xlu0 %453 }
 0x128   :  { %v476_v37 = vadd.f32 %v475_v36, %v454_v59 }
 0x12a   :  { %v456_v60 = vpop.xlane.xlu1 %455 }
 0x12b   :  { %v477_v61 = vadd.f32 %v476_v37, %v456_v60 }
 0x12c   :  { %v458_v62 = vpop.xlane.xlu0 %457 }
 0x12d   :  { %v478_v0 = vadd.f32 %v477_v61, %v458_v62 }
 0x12e   :  { %v460_v1 = vpop.xlane.xlu1 %459 }
 0x12f   :  { %v479_v3 = vadd.f32 %v478_v0, %v460_v1 }
 0x131   :  { %v462_v6 = vpop.xlane.xlu0 %461 }
 0x132   :  { %v480_v8 = vadd.f32 %v479_v3, %v462_v6 }
 0x133   :  { %v464_v11 = vpop.xlane.xlu1 %463 }
 0x134   :  { %v481_v10 = vadd.f32 %v480_v8, %v464_v11 }
 0x137   :  { %v466_v12 = vpop.xlane.xlu0 %465 }
 0x138   :  { %v482_v17 = vadd.f32 %v481_v10, %v466_v12 }
 0x13e   :  { %v468_v20 = vpop.xlane.xlu1 %467 }
 0x13f   :  { %v483_v21 = vadd.f32 %v482_v17, %v468_v20 }
 0x141   :  { %v484_v22 = vrot.slane %v483_v21, 4 }
 0x143   :  { %v485_v14 = vadd.f32 %v484_v22, %v483_v21 }
 0x145   :  { %v486_v25 = vrot.slane %v485_v14, 2 }
 0x147   :  { %v487_v26 = vadd.f32 %v486_v25, %v485_v14 }
 0x149   :  { %v488_v27 = vrot.slane %v487_v26, 1 }
 0x14b   :  { %v489_v28 = vadd.f32 %v488_v27, %v487_v26 }
 0x14d   :  { %v490_v15 = vmul.f32 6.1035156e-05, %v489_v28 }
 0x14f   :  { %v1359_v32 = vsub.f32 %v1192_v63, %v490_v15  ;;  %v1362_v34 = vsub.f32 %v1169_v39, %v490_v15  ;;  %v1369_v38 = vsub.f32 %v1197_v7, %v490_v15  ;;  %v1372_v19 = vsub.f32 %v1179_v49, %v490_v15 }
 0x150   :  { %v1379_v40 = vsub.f32 %v1212_v33, %v490_v15  ;;  %v1382_v43 = vsub.f32 %v1203_v16, %v490_v15  ;;  %v1389_v23 = vsub.f32 %v1249_v42, %v490_v15  ;;  %v1392_v44 = vsub.f32 %v1225_v54, %v490_v15 }
 0x151   :  { %v508_v35 = vmul.f32 %v1359_v32, %v1359_v32  ;;  %v507_v5 = vmul.f32 %v1362_v34, %v1362_v34  ;;  %v510_v63 = vmul.f32 %v1369_v38, %v1369_v38  ;;  %v509_v39 = vmul.f32 %v1372_v19, %v1372_v19 }
 0x152   :  { %v512_v49 = vmul.f32 %v1379_v40, %v1379_v40  ;;  %v511_v7 = vmul.f32 %v1382_v43, %v1382_v43  ;;  %v514_v16 = vmul.f32 %v1389_v23, %v1389_v23  ;;  %v513_v33 = vmul.f32 %v1392_v44, %v1392_v44 }
 0x153   :  { %525 = vadd.xlane.f32.xlu1 %v508_v35  ;;  %523 = vadd.xlane.f32.xlu0 %v507_v5  ;;  %v1399_v24 = vsub.f32 %v1310_v2, %v490_v15  ;;  %v1402_v46 = vsub.f32 %v1297_v55, %v490_v15  ;;  %v1409_v47 = vsub.f32 %v1327_v4, %v490_v15 }
 0x154   :  { %v1412_v48 = vsub.f32 %v1319_v13, %v490_v15  ;;  %v1419_v30 = vsub.f32 %v1342_v18, %v490_v15  ;;  %v1422_v50 = vsub.f32 %v1335_v29, %v490_v15  ;;  %v1429_v51 = vsub.f32 %v1355_v45, %v490_v15 }
 0x155   :  { %v516_v54 = vmul.f32 %v1399_v24, %v1399_v24  ;;  %v515_v42 = vmul.f32 %v1402_v46, %v1402_v46  ;;  %v518_v55 = vmul.f32 %v1409_v47, %v1409_v47  ;;  %v1432_v52 = vsub.f32 %v1349_v41, %v490_v15 }
 0x156   :  { %v517_v2 = vmul.f32 %v1412_v48, %v1412_v48  ;;  %v520_v13 = vmul.f32 %v1419_v30, %v1419_v30  ;;  %v519_v4 = vmul.f32 %v1422_v50, %v1422_v50  ;;  %v522_v29 = vmul.f32 %v1429_v51, %v1429_v51 }
 0x157   :  { %529 = vadd.xlane.f32.xlu1 %v510_v63  ;;  %527 = vadd.xlane.f32.xlu0 %v509_v39  ;;  %v521_v18 = vmul.f32 %v1432_v52, %v1432_v52 }
 0x15b   :  { %533 = vadd.xlane.f32.xlu1 %v512_v49  ;;  %531 = vadd.xlane.f32.xlu0 %v511_v7 }
 0x15f   :  { %537 = vadd.xlane.f32.xlu1 %v514_v16  ;;  %535 = vadd.xlane.f32.xlu0 %v513_v33  ;;  %v596_v33 = vld [vmem:[#allocation7 + $0x8] sm:$0xff] }
 0x163   :  { %541 = vadd.xlane.f32.xlu1 %v516_v54  ;;  %539 = vadd.xlane.f32.xlu0 %v515_v42  ;;  %v595_v42 = vld [vmem:[#allocation7] sm:$0xff] }
 0x167   :  { %545 = vadd.xlane.f32.xlu1 %v518_v55  ;;  %543 = vadd.xlane.f32.xlu0 %v517_v2  ;;  %v598_v55 = vld [vmem:[#allocation7 + $0x18] sm:$0xff]  ;;  %v597_v2 = vld [vmem:[#allocation7 + $0x10] sm:$0xff] }
 0x16b   :  { %549 = vadd.xlane.f32.xlu1 %v520_v13  ;;  %547 = vadd.xlane.f32.xlu0 %v519_v4  ;;  %v628_v4 = vld [vmem:[#allocation9 + $0x8] sm:$0xff] }
 0x16f   :  { %553 = vadd.xlane.f32.xlu1 %v522_v29  ;;  %551 = vadd.xlane.f32.xlu0 %v521_v18 }
 0x1e0   :  { %v526_v53 = vpop.xlane.xlu1 %525  ;;  %v524_v31 = vpop.xlane.xlu0 %523 }
 0x1e1   :  { %v555_v56 = vadd.f32 %v526_v53, %v524_v31  ;;  %v600_v31 = vld [vmem:[#allocation7 + $0x28] sm:$0xff] }
 0x1e4   :  { %v530_v9 = vpop.xlane.xlu1 %529  ;;  %v528_v57 = vpop.xlane.xlu0 %527 }
 0x1e5   :  { %v556_v45 = vadd.f32 %v555_v56, %v528_v57  ;;  %v599_v56 = vld [vmem:[#allocation7 + $0x20] sm:$0xff]  ;;  %v630_v57 = vld [vmem:[#allocation9 + $0x18] sm:$0xff] }
 0x1e7   :  { %v557_v58 = vadd.f32 %v556_v45, %v530_v9  ;;  %v627_v9 = vld [vmem:[#allocation9] sm:$0xff]  ;;  %v629_v45 = vld [vmem:[#allocation9 + $0x10] sm:$0xff] }
 0x1e8   :  { %v534_v36 = vpop.xlane.xlu1 %533  ;;  %v532_v41 = vpop.xlane.xlu0 %531 }
 0x1e9   :  { %v558_v59 = vadd.f32 %v557_v58, %v532_v41 }
 0x1eb   :  { %v559_v37 = vadd.f32 %v558_v59, %v534_v36 }
 0x1ec   :  { %v538_v60 = vpop.xlane.xlu1 %537  ;;  %v536_v61 = vpop.xlane.xlu0 %535 }
 0x1ed   :  { %v560_v62 = vadd.f32 %v559_v37, %v536_v61  ;;  %v602_v37 = vld [vmem:[#allocation7 + $0x38] sm:$0xff] }
 0x1ef   :  { %v561_v0 = vadd.f32 %v560_v62, %v538_v60  ;;  %v601_v62 = vld [vmem:[#allocation7 + $0x30] sm:$0xff] }
 0x1f0   :  { %v542_v1 = vpop.xlane.xlu1 %541  ;;  %v540_v3 = vpop.xlane.xlu0 %539 }
 0x1f1   :  { %v562_v6 = vadd.f32 %v561_v0, %v540_v3 }
 0x1f3   :  { %v563_v8 = vadd.f32 %v562_v6, %v542_v1  ;;  %v632_v6 = vld [vmem:[#allocation9 + $0x28] sm:$0xff] }
 0x1f4   :  { %v546_v11 = vpop.xlane.xlu1 %545  ;;  %v544_v10 = vpop.xlane.xlu0 %543 }
 0x1f5   :  { %v564_v12 = vadd.f32 %v563_v8, %v544_v10  ;;  %v676_v8 = vld [vmem:[#allocation10 + $0x8] sm:$0xff] }
 0x1f7   :  { %v565_v17 = vadd.f32 %v564_v12, %v546_v11  ;;  %v675_v11 = vld [vmem:[#allocation10] sm:$0xff] }
 0x1f8   :  { %v550_v20 = vpop.xlane.xlu1 %549  ;;  %v548_v21 = vpop.xlane.xlu0 %547 }
 0x1f9   :  { %v566_v22 = vadd.f32 %v565_v17, %v548_v21 }
 0x1fb   :  { %v567_v14 = vadd.f32 %v566_v22, %v550_v20 }
 0x1fc   :  { %v552_v25 = vpop.xlane.xlu0 %551  ;;  %v554_v27 = vpop.xlane.xlu1 %553 }
 0x1fd   :  { %v568_v26 = vadd.f32 %v567_v14, %v552_v25  ;;  %v633_v14 = vld [vmem:[#allocation9 + $0x30] sm:$0xff] }
 0x1ff   :  { %v569_v28 = vadd.f32 %v568_v26, %v554_v27  ;;  %v678_v27 = vld [vmem:[#allocation10 + $0x18] sm:$0xff] }
 0x201   :  { %v570_v15 = vrot.slane %v569_v28, 4 }
 0x203   :  { %v571_v35 = vadd.f32 %v570_v15, %v569_v28  ;;  %v677_v15 = vld [vmem:[#allocation10 + $0x10] sm:$0xff] }
 0x205   :  { %v572_v5 = vrot.slane %v571_v35, 2 }
 0x207   :  { %v573_v63 = vadd.f32 %v572_v5, %v571_v35  ;;  %v604_v5 = vld [vmem:[#allocation7 + $0x48] sm:$0xff] }
 0x209   :  { %v574_v39 = vrot.slane %v573_v63, 1 }
 0x20b   :  { %v575_v49 = vadd.f32 %v574_v39, %v573_v63  ;;  %v603_v63 = vld [vmem:[#allocation7 + $0x40] sm:$0xff] }
 0x20d   :  { %v576_v7 = vmul.f32 6.1035156e-05, %v575_v49 }
 0x20f   :  { %v577_v16 = vadd.f32 1e-05, %v576_v7 }
 0x211   :  { %804 = vrsqrt.f32 %v577_v16 }
 0x21b   :  { %v1438_v54 = vpop.eup %804 }
 0x21c   :  { %v580_v13 = vmul.f32 %v1438_v54, %v1359_v32  ;;  %v579_v29 = vmul.f32 %v1438_v54, %v1362_v34  ;;  %v582_v18 = vmul.f32 %v1438_v54, %v1369_v38  ;;  %v581_v53 = vmul.f32 %v1438_v54, %v1372_v19 }
 0x21d   :  { %v584_v58 = vmul.f32 %v1438_v54, %v1379_v40  ;;  %v583_v32 = vmul.f32 %v1438_v54, %v1382_v43  ;;  %v586_v34 = vmul.f32 %v1438_v54, %v1389_v23  ;;  %v585_v38 = vmul.f32 %v1438_v54, %v1392_v44  ;;  %v631_v43 = vld [vmem:[#allocation9 + $0x20] sm:$0xff]  ;;  %v634_v44 = vld [vmem:[#allocation9 + $0x38] sm:$0xff] }
 0x21e   :  { %v612_v36 = vmul.f32 %v596_v33, %v580_v13  ;;  %v611_v41 = vmul.f32 %v595_v42, %v579_v29  ;;  %v614_v19 = vmul.f32 %v598_v55, %v582_v18  ;;  %v613_v59 = vmul.f32 %v597_v2, %v581_v53  ;;  %v680_v13 = vld [vmem:[#allocation10 + $0x28] sm:$0xff]  ;;  %v606_v53 = vld [vmem:[#allocation7 + $0x58] sm:$0xff] }
 0x21f   :  { %v616_v60 = vmul.f32 %v600_v31, %v584_v58  ;;  %v615_v61 = vmul.f32 %v599_v56, %v583_v32  ;;  %v618_v23 = vmul.f32 %v602_v37, %v586_v34  ;;  %v617_v17 = vmul.f32 %v601_v62, %v585_v38  ;;  %v636_v56 = vld [vmem:[#allocation9 + $0x48] sm:$0xff]  ;;  %v682_v58 = vld [vmem:[#allocation10 + $0x38] sm:$0xff]  ;;  %v681_v32 = vld [vmem:[#allocation10 + $0x30] sm:$0xff] }
 0x220   :  { %v644_v0 = vadd.f32 %v628_v4, %v612_v36  ;;  %v643_v1 = vadd.f32 %v627_v9, %v611_v41  ;;  %v646_v40 = vadd.f32 %v630_v57, %v614_v19  ;;  %v645_v3 = vadd.f32 %v629_v45, %v613_v59  ;;  %v679_v4 = vld [vmem:[#allocation10 + $0x20] sm:$0xff]  ;;  %v605_v9 = vld [vmem:[#allocation7 + $0x50] sm:$0xff]  ;;  %v638_v19 = vld [vmem:[#allocation9 + $0x58] sm:$0xff] }
 0x221   :  { %v648_v21 = vadd.f32 %v632_v6, %v616_v60  ;;  %v647_v22 = vadd.f32 %v631_v43, %v615_v61  ;;  %v650_v35 = vadd.f32 %v634_v44, %v618_v23  ;;  %v649_v39 = vadd.f32 %v633_v14, %v617_v17  ;;  %v608_v37 = vld [vmem:[#allocation7 + $0x68] sm:$0xff]  ;;  %v607_v60 = vld [vmem:[#allocation7 + $0x60] sm:$0xff]  ;;  %v637_v61 = vld [vmem:[#allocation9 + $0x50] sm:$0xff] }
 0x222   :  { %v660_v10 = vadd.f32 %v644_v0, %v644_v0  ;;  %v659_v12 = vadd.f32 %v643_v1, %v643_v1  ;;  %v662_v20 = vadd.f32 %v646_v40, %v646_v40  ;;  %v661_v28 = vadd.f32 %v645_v3, %v645_v3  ;;  %v610_v23 = vld [vmem:[#allocation7 + $0x78] sm:$0xff]  ;;  %v683_v44 = vld [vmem:[#allocation10 + $0x40] sm:$0xff]  ;;  %v609_v17 = vld [vmem:[#allocation7 + $0x70] sm:$0xff] }
 0x223   :  { %v588_v49 = vmul.f32 %v1438_v54, %v1399_v24  ;;  %v587_v7 = vmul.f32 %v1438_v54, %v1402_v46  ;;  %v664_v33 = vadd.f32 %v648_v21, %v648_v21  ;;  %v663_v42 = vadd.f32 %v647_v22, %v647_v22  ;;  %v635_v24 = vld [vmem:[#allocation9 + $0x40] sm:$0xff] }
 0x224   :  { %v692_v25 = vmul.f32 %v676_v8, %v660_v10  ;;  %v691_v26 = vmul.f32 %v675_v11, %v659_v12  ;;  %v694_v16 = vmul.f32 %v678_v27, %v662_v20  ;;  %v590_v55 = vmul.f32 %v1438_v54, %v1409_v47  ;;  %v640_v8 = vld [vmem:[#allocation9 + $0x68] sm:$0xff]  ;;  %v639_v11 = vld [vmem:[#allocation9 + $0x60] sm:$0xff]  ;;  %v642_v27 = vld [vmem:[#allocation9 + $0x78] sm:$0xff] }
 0x225   :  { %v693_v2 = vmul.f32 %v677_v15, %v661_v28  ;;  %v620_v29 = vmul.f32 %v604_v5, %v588_v49  ;;  %v619_v18 = vmul.f32 %v603_v63, %v587_v7  ;;  %v589_v31 = vmul.f32 %v1438_v54, %v1412_v48  ;;  %v684_v12 = vld [vmem:[#allocation10 + $0x48] sm:$0xff]  ;;  %v686_v15 = vld [vmem:[#allocation10 + $0x58] sm:$0xff]  ;;  %v641_v5 = vld [vmem:[#allocation9 + $0x70] sm:$0xff] }
 0x226   :  { %709 = vadd.xlane.f32.xlu1 %v692_v25  ;;  %707 = vadd.xlane.f32.xlu0 %v691_v26  ;;  %v666_v46 = vadd.f32 %v650_v35, %v650_v35  ;;  %v665_v57 = vadd.f32 %v649_v39, %v649_v39  ;;  %v696_v45 = vmul.f32 %v680_v13, %v664_v33  ;;  %v685_v35 = vld [vmem:[#allocation10 + $0x50] sm:$0xff]  ;;  %v687_v33 = vld [vmem:[#allocation10 + $0x60] sm:$0xff] }
 0x227   :  { %v622_v47 = vmul.f32 %v606_v53, %v590_v55  ;;  %v592_v34 = vmul.f32 %v1438_v54, %v1419_v30  ;;  %v591_v38 = vmul.f32 %v1438_v54, %v1422_v50  ;;  %v695_v36 = vmul.f32 %v679_v4, %v663_v42  ;;  %v690_v4 = vld [vmem:[#allocation10 + $0x78] sm:$0xff] }
 0x228   :  { %v652_v41 = vadd.f32 %v636_v56, %v620_v29  ;;  %v651_v48 = vadd.f32 %v635_v24, %v619_v18  ;;  %v621_v59 = vmul.f32 %v605_v9, %v589_v31  ;;  %v698_v62 = vmul.f32 %v682_v58, %v666_v46  ;;  %v689_v29 = vld [vmem:[#allocation10 + $0x70] sm:$0xff] }
 0x229   :  { %v697_v0 = vmul.f32 %v681_v32, %v665_v57  ;;  %v654_v1 = vadd.f32 %v638_v19, %v622_v47  ;;  %v624_v40 = vmul.f32 %v608_v37, %v592_v34  ;;  %v623_v3 = vmul.f32 %v607_v60, %v591_v38 }
 0x22a   :  { %713 = vadd.xlane.f32.xlu1 %v694_v16  ;;  %711 = vadd.xlane.f32.xlu0 %v693_v2  ;;  %v594_v30 = vmul.f32 %v1438_v54, %v1429_v51  ;;  %v668_v6 = vadd.f32 %v652_v41, %v652_v41  ;;  %v667_v50 = vadd.f32 %v651_v48, %v651_v48  ;;  %v688_v16 = vld [vmem:[#allocation10 + $0x68] sm:$0xff] }
 0x22b   :  { %v653_v43 = vadd.f32 %v637_v61, %v621_v59  ;;  %v593_v10 = vmul.f32 %v1438_v54, %v1432_v52  ;;  %v670_v20 = vadd.f32 %v654_v1, %v654_v1  ;;  %v656_v21 = vadd.f32 %v640_v8, %v624_v40 }
 0x22c   :  { %v655_v22 = vadd.f32 %v639_v11, %v623_v3  ;;  %v626_v14 = vmul.f32 %v610_v23, %v594_v30  ;;  %v700_v25 = vmul.f32 %v684_v12, %v668_v6  ;;  %v699_v51 = vmul.f32 %v683_v44, %v667_v50 }
 0x22d   :  { %v669_v26 = vadd.f32 %v653_v43, %v653_v43  ;;  %v625_v28 = vmul.f32 %v609_v17, %v593_v10  ;;  %v672_v52 = vadd.f32 %v656_v21, %v656_v21  ;;  %v702_v63 = vmul.f32 %v686_v15, %v670_v20 }
 0x22e   :  { %717 = vadd.xlane.f32.xlu1 %v696_v45  ;;  %715 = vadd.xlane.f32.xlu0 %v695_v36  ;;  %v658_v54 = vadd.f32 %v642_v27, %v626_v14  ;;  %v671_v49 = vadd.f32 %v655_v22, %v655_v22  ;;  %v761_v20 = vstv %s795_s13 }
 0x22f   :  { %v701_v39 = vmul.f32 %v685_v35, %v669_v26  ;;  %v657_v7 = vadd.f32 %v641_v5, %v625_v28  ;;  %v704_v42 = vmul.f32 %v688_v16, %v672_v52 }
 0x230   :  { %v703_v55 = vmul.f32 %v687_v33, %v671_v49  ;;  %v674_v2 = vadd.f32 %v658_v54, %v658_v54 }
 0x231   :  { %v673_v13 = vadd.f32 %v657_v7, %v657_v7 }
 0x232   :  { %721 = vadd.xlane.f32.xlu1 %v698_v62  ;;  %719 = vadd.xlane.f32.xlu0 %v697_v0  ;;  %v706_v18 = vmul.f32 %v690_v4, %v674_v2 }
 0x233   :  { %v705_v53 = vmul.f32 %v689_v29, %v673_v13 }
 0x236   :  { %725 = vadd.xlane.f32.xlu1 %v700_v25  ;;  %723 = vadd.xlane.f32.xlu0 %v699_v51 }
 0x23a   :  { %729 = vadd.xlane.f32.xlu1 %v702_v63  ;;  %727 = vadd.xlane.f32.xlu0 %v701_v39 }
 0x23e   :  { %733 = vadd.xlane.f32.xlu1 %v704_v42  ;;  %731 = vadd.xlane.f32.xlu0 %v703_v55 }
 0x242   :  { %737 = vadd.xlane.f32.xlu1 %v706_v18  ;;  %735 = vadd.xlane.f32.xlu0 %v705_v53 }
 0x2b3   :  { %v710_v31 = vpop.xlane.xlu1 %709  ;;  %v708_v56 = vpop.xlane.xlu0 %707 }
 0x2b4   :  { %v739_v24 = vadd.f32 %v710_v31, %v708_v56 }
 0x2b7   :  { %v714_v9 = vpop.xlane.xlu1 %713  ;;  %v712_v46 = vpop.xlane.xlu0 %711 }
 0x2b8   :  { %v740_v57 = vadd.f32 %v739_v24, %v712_v46 }
 0x2ba   :  { %v741_v45 = vadd.f32 %v740_v57, %v714_v9 }
 0x2bb   :  { %v718_v58 = vpop.xlane.xlu1 %717  ;;  %v716_v32 = vpop.xlane.xlu0 %715 }
 0x2bc   :  { %v742_v47 = vadd.f32 %v741_v45, %v716_v32 }
 0x2be   :  { %v743_v34 = vadd.f32 %v742_v47, %v718_v58 }
 0x2bf   :  { %v722_v38 = vpop.xlane.xlu1 %721  ;;  %v720_v36 = vpop.xlane.xlu0 %719 }
 0x2c0   :  { %v744_v41 = vadd.f32 %v743_v34, %v720_v36 }
 0x2c2   :  { %v745_v48 = vadd.f32 %v744_v41, %v722_v38 }
 0x2c3   :  { %v726_v19 = vpop.xlane.xlu1 %725  ;;  %v724_v59 = vpop.xlane.xlu0 %723 }
 0x2c4   :  { %v746_v37 = vadd.f32 %v745_v48, %v724_v59 }
 0x2c6   :  { %v747_v60 = vadd.f32 %v746_v37, %v726_v19 }
 0x2c7   :  { %v730_v61 = vpop.xlane.xlu1 %729  ;;  %v728_v62 = vpop.xlane.xlu0 %727 }
 0x2c8   :  { %v748_v0 = vadd.f32 %v747_v60, %v728_v62 }
 0x2ca   :  { %v749_v1 = vadd.f32 %v748_v0, %v730_v61 }
 0x2cb   :  { %v734_v40 = vpop.xlane.xlu1 %733  ;;  %v732_v3 = vpop.xlane.xlu0 %731 }
 0x2cc   :  { %v750_v30 = vadd.f32 %v749_v1, %v732_v3 }
 0x2ce   :  { %v751_v6 = vadd.f32 %v750_v30, %v734_v40 }
 0x2cf   :  { %v736_v50 = vpop.xlane.xlu0 %735  ;;  %v738_v8 = vpop.xlane.xlu1 %737 }
 0x2d0   :  { %v752_v43 = vadd.f32 %v751_v6, %v736_v50 }
 0x2d2   :  { %v753_v11 = vadd.f32 %v752_v43, %v738_v8 }
 0x2d4   :  { %v754_v23 = vrot.slane %v753_v11, 4 }
 0x2d6   :  { %v755_v10 = vadd.f32 %v754_v23, %v753_v11 }
 0x2d8   :  { %v756_v12 = vrot.slane %v755_v10, 2 }
 0x2da   :  { %v757_v44 = vadd.f32 %v756_v12, %v755_v10 }
 0x2dc   :  { %v758_v17 = vrot.slane %v757_v44, 1 }
 0x2de   :  { %v759_v21 = vadd.f32 %v758_v17, %v757_v44 }
 0x2e0   :  { %v762_v22 = vadd.f32 %v761_v20, %v759_v21 }
 0x2e2   :  { %763 = vst [vmem:[#allocation12] sm:$0x1] %v762_v22 }
 0x2e3   :  { %915 = shalt.err (!%p912_p11)
}
 0x2e4   :  { %s916_s18 = scalar_lea.hbm %s1489_s5, 16 }
 0x2e5   :  { %p917_p12 = scmp.ne.s32.totalorder %s1489_s5, %s916_s18  ;;  %p920_p13 = scmp.lt.u32.totalorder %s916_s18, %s1489_s5 }
 0x2e7   :  { %p922_p0 = pnand %p920_p13, %p917_p12 }
 0x2e9   :  { %925 = shalt.err (!%p922_p0)
}
 0x2ea   :  { %773 = dma.vmem_to_hbm [thread:$0]  %s771_s15, 16, %s1489_s5, [#allocation4]  }
 0x2eb   :  { %934 = dma.done.wait [#allocation4], 16  }
 0x2ec   :  { %935 = vsyncadd [#allocation4], 4294967280 }
 0x2ed   :  { %777 = vsyncpa [#allocation3], 1 }
 0x2ee   :  { %778 = vsyncpa [#allocation8], 1 }
 0x2ef   :  { %779 = vsyncpa [#allocation11], 1 }
 0x2f0   :  { %780 = vsyncpa [#allocation4], 1 }
 0x2f1   :  { %781 = vsyncpa [#allocation5], 1 }

</bundles_post_ra>
